<compile_context>
chip_gen: v7x
topology: tpu7x:2x2x1
jax: 0.10.0
libtpu: 0.0.40
codegen_flags: <defaults>
</compile_context>

<pallas_src>
import jax
import jax.numpy as jnp
from jax.experimental import pallas as pl
from jax.experimental.pallas import tpu as pltpu


def _rbf_kernel_t(xt_ref, c_ref, nhc2_ref, inv_ref, w_ref, b_ref, ot_ref):
    xt = xt_ref[...]        # (D, TB)  features x batch-tile (batch on lanes)
    c = c_ref[...]          # (K, D)   centers
    nhc2 = nhc2_ref[...]    # (K, 1)   -0.5 * ||c_k||^2
    inv = inv_ref[...]      # (K, 1)   1 / |sigma^2_k|
    w = w_ref[...]          # (O, K)
    b = b_ref[...]          # (O, 1)

    # ||x_b||^2 per batch column (cross-sublane reduce, XLU).
    x2t = jnp.sum(xt * xt, axis=0, keepdims=True)                     # (1, TB)

    # x . c via the MXU.
    xct = jnp.dot(c, xt, preferred_element_type=jnp.float32)          # (K, TB)

    # arg = -(||x||^2 + ||c||^2 - 2 x.c) / (2*|sigma^2|)
    #     = (x.c - 0.5*||x||^2 - 0.5*||c||^2) * (1/|sigma^2|)
    arg = (xct - 0.5 * x2t + nhc2) * inv                               # (K, TB)
    arg = jnp.minimum(arg, 0.0)        # squared distance is >= 0 (cancellation guard)
    phit = jnp.exp(arg)                                                # (K, TB)

    outt = jnp.dot(w, phit, preferred_element_type=jnp.float32) + b   # (O, TB)
    ot_ref[...] = outt.astype(ot_ref.dtype)


def rbf_forward(x, C, sigma_square, w, b, *, block_b=1024):
    """RBF forward.

    x: (B, D); C: (1, K, D); sigma_square: (1, K); w: (1, O, K); b: (1, O, 1).
    Returns (B, O).
    """
    B, D = x.shape
    K = C.shape[1]
    O = w.shape[1]

    # Per-k constants, computed once in plain JAX (tiny) and kept VMEM-resident.
    c2d = C.reshape(K, D).astype(jnp.float32)                          # (K, D)
    nhc2 = -0.5 * jnp.sum(c2d * c2d, axis=-1, keepdims=True)           # (K, 1)
    inv = (1.0 / jnp.abs(sigma_square.reshape(K, 1))).astype(jnp.float32)  # (K, 1)
    w2d = w.reshape(O, K).astype(jnp.float32)                          # (O, K)
    b2d = b.reshape(O, 1).astype(jnp.float32)                          # (O, 1)

    # Batch goes on lanes: transpose x and pad B to a lane-friendly tile size.
    LANE = 128
    b_pad = LANE * pl.cdiv(B, LANE)
    tb = min(b_pad, block_b)                 # batch tile (multiple of 128)
    b_pad = tb * pl.cdiv(b_pad, tb)
    xt = jnp.pad(x.T.astype(jnp.float32), ((0, 0), (0, b_pad - B)))    # (D, b_pad)

    nb = b_pad // tb
    cost = pl.CostEstimate(
        flops=2 * b_pad * K * (D + O),
        transcendentals=b_pad * K,
        bytes_accessed=4 * (D * b_pad + K * D + 2 * K + O * K + O + O * b_pad),
    )

    outt = pl.pallas_call(
        _rbf_kernel_t,
        out_shape=jax.ShapeDtypeStruct((O, b_pad), jnp.float32),
        grid=(nb,),
        in_specs=[
            pl.BlockSpec((D, tb), lambda i: (0, i)),   # x^T: blocked over batch
            pl.BlockSpec((K, D), lambda i: (0, 0)),    # C: resident
            pl.BlockSpec((K, 1), lambda i: (0, 0)),    # -0.5*||c||^2: resident
            pl.BlockSpec((K, 1), lambda i: (0, 0)),    # 1/|sigma^2|: resident
            pl.BlockSpec((O, K), lambda i: (0, 0)),    # w: resident
            pl.BlockSpec((O, 1), lambda i: (0, 0)),    # b: resident
        ],
        out_specs=pl.BlockSpec((O, tb), lambda i: (0, i)),
        compiler_params=pltpu.CompilerParams(
            dimension_semantics=("parallel",),         # shardable across TCs on v7x
        ),
        cost_estimate=cost,
    )(xt, c2d, nhc2, inv, w2d, b2d)

    # Drop the batch padding and transpose back to (B, O) in the wrapper.
    return outt[:, :B].T.astype(x.dtype)


def action_value_forward(obs, act, params):
    """ActionValue.forward: q = RBF(cat([obs, act], -1)).squeeze(-1)."""
    x = jnp.concatenate([obs, act], axis=-1)
    q = rbf_forward(x, params["C"], params["sigma_square"], params["w"], params["b"])
    return jnp.squeeze(q, -1)


def action_value_reference(obs, act, params):
    """Pure-JAX mirror of the PyTorch forward."""
    x = jnp.concatenate([obs, act], axis=-1)
    r = jnp.sum((x[:, None, :] - params["C"]) ** 2, axis=-1)                   # (B, K)
    phi = jnp.exp(-r / (2.0 * jnp.abs(params["sigma_square"])))[..., None]     # (B, K, 1)
    out = (params["w"] @ phi + params["b"]).squeeze(-1)                        # (B, O)
    return jnp.squeeze(out, -1)                                                # (B,)


if __name__ == "__main__":
    # ActionValue hyperparameters: input_dim = obs_dim + act_dim, out_dim = 1.
    obs_dim, act_dim, num_kernel = 24, 8, 16
    batch = 8
    input_dim = obs_dim + act_dim

    key = jax.random.PRNGKey(0)
    ko, ka, kc, ks, kw, kb = jax.random.split(key, 6)

    obs = jax.random.normal(ko, (batch, obs_dim), dtype=jnp.float32)
    act = jax.random.normal(ka, (batch, act_dim), dtype=jnp.float32)
    params = {
        "C": jax.random.normal(kc, (1, num_kernel, input_dim), dtype=jnp.float32),
        "sigma_square": jnp.abs(
            jax.random.normal(ks, (1, num_kernel), dtype=jnp.float32)
        ) + 0.1,
        "w": jax.random.normal(kw, (1, 1, num_kernel), dtype=jnp.float32),
        "b": jax.random.normal(kb, (1, 1, 1), dtype=jnp.float32),
    }

    q = action_value_forward(obs, act, params)
    q = jax.block_until_ready(q)

    ref = action_value_reference(obs, act, params)
    assert q.shape == (batch,)
    assert jnp.allclose(q, ref, atol=1e-4, rtol=1e-4)

    print("KERNEL_OK")
</pallas_src>

<mosaic_0001>
module attributes {stable_mosaic.version = 11 : i64} {
  func.func @_rbf_kernel_t(%arg0: i32, %arg1: memref<32x128xf32, #tpu.memory_space<vmem>>, %arg2: memref<16x32xf32, #tpu.memory_space<vmem>>, %arg3: memref<16x1xf32, #tpu.memory_space<vmem>>, %arg4: memref<16x1xf32, #tpu.memory_space<vmem>>, %arg5: memref<1x16xf32, #tpu.memory_space<vmem>>, %arg6: memref<1x1xf32, #tpu.memory_space<vmem>>, %arg7: memref<1x128xf32, #tpu.memory_space<vmem>>) attributes {dimension_semantics = [#tpu.dimension_semantics<parallel>], iteration_bounds = array<i64: 1>, scalar_prefetch = 0 : i64, scratch_operands = 0 : i64, tpu.core_type = #tpu.core_type<tc>, window_params = [{transform_indices = @transform_0, window_bounds = array<i64: 32, 128>}, {pipeline_mode = #tpu.pipeline_mode<synchronous>, transform_indices = @transform_1, window_bounds = array<i64: 16, 32>}, {pipeline_mode = #tpu.pipeline_mode<synchronous>, transform_indices = @transform_2, window_bounds = array<i64: 16, 1>}, {pipeline_mode = #tpu.pipeline_mode<synchronous>, transform_indices = @transform_3, window_bounds = array<i64: 16, 1>}, {pipeline_mode = #tpu.pipeline_mode<synchronous>, transform_indices = @transform_4, window_bounds = array<i64: 1, 16>}, {pipeline_mode = #tpu.pipeline_mode<synchronous>, transform_indices = @transform_5, window_bounds = array<i64: 1, 1>}, {transform_indices = @transform_6, window_bounds = array<i64: 1, 128>}]} {
    %c0 = arith.constant 0 : index
    %c0_0 = arith.constant 0 : index
    %0 = vector.load %arg1[%c0, %c0_0] : memref<32x128xf32, #tpu.memory_space<vmem>>, vector<32x128xf32>
    %c0_1 = arith.constant 0 : index
    %c0_2 = arith.constant 0 : index
    %1 = vector.load %arg2[%c0_1, %c0_2] : memref<16x32xf32, #tpu.memory_space<vmem>>, vector<16x32xf32>
    %c0_3 = arith.constant 0 : index
    %c0_4 = arith.constant 0 : index
    %2 = vector.load %arg3[%c0_3, %c0_4] : memref<16x1xf32, #tpu.memory_space<vmem>>, vector<16x1xf32>
    %c0_5 = arith.constant 0 : index
    %c0_6 = arith.constant 0 : index
    %3 = vector.load %arg4[%c0_5, %c0_6] : memref<16x1xf32, #tpu.memory_space<vmem>>, vector<16x1xf32>
    %c0_7 = arith.constant 0 : index
    %c0_8 = arith.constant 0 : index
    %4 = vector.load %arg5[%c0_7, %c0_8] : memref<1x16xf32, #tpu.memory_space<vmem>>, vector<1x16xf32>
    %c0_9 = arith.constant 0 : index
    %c0_10 = arith.constant 0 : index
    %5 = vector.load %arg6[%c0_9, %c0_10] : memref<1x1xf32, #tpu.memory_space<vmem>>, vector<1x1xf32>
    %6 = arith.mulf %0, %0 : vector<32x128xf32>
    %cst = arith.constant dense<0.000000e+00> : vector<128xf32>
    %7 = vector.multi_reduction <add>, %6, %cst [0] : vector<32x128xf32> to vector<128xf32>
    %8 = vector.shape_cast %7 : vector<128xf32> to vector<1x128xf32>
    %cst_11 = arith.constant dense<0.000000e+00> : vector<16x128xf32>
    %9 = tpu.matmul %1, %0, %cst_11 {dimension_numbers = #tpu.dot_dimension_numbers<[1], [0], [0], [1], [0, 0, 1, 1], [], []>} : vector<16x32xf32>, vector<32x128xf32>, vector<16x128xf32> -> vector<16x128xf32>
    %cst_12 = arith.constant 5.000000e-01 : f32
    %10 = vector.broadcast %cst_12 : f32 to vector<1x128xf32>
    %11 = arith.mulf %10, %8 : vector<1x128xf32>
    %12 = vector.broadcast %11 : vector<1x128xf32> to vector<16x128xf32>
    %13 = arith.subf %9, %12 : vector<16x128xf32>
    %14 = vector.broadcast %2 : vector<16x1xf32> to vector<16x128xf32>
    %15 = arith.addf %13, %14 : vector<16x128xf32>
    %16 = vector.broadcast %3 : vector<16x1xf32> to vector<16x128xf32>
    %17 = arith.mulf %15, %16 : vector<16x128xf32>
    %cst_13 = arith.constant 0.000000e+00 : f32
    %18 = vector.broadcast %cst_13 : f32 to vector<16x128xf32>
    %19 = arith.minimumf %17, %18 : vector<16x128xf32>
    %20 = math.exp %19 : vector<16x128xf32>
    %cst_14 = arith.constant dense<0.000000e+00> : vector<1x128xf32>
    %21 = tpu.matmul %4, %20, %cst_14 {dimension_numbers = #tpu.dot_dimension_numbers<[1], [0], [0], [1], [0, 0, 1, 1], [], []>} : vector<1x16xf32>, vector<16x128xf32>, vector<1x128xf32> -> vector<1x128xf32>
    %22 = vector.broadcast %5 : vector<1x1xf32> to vector<1x128xf32>
    %23 = arith.addf %21, %22 : vector<1x128xf32>
    %c0_15 = arith.constant 0 : index
    %c0_16 = arith.constant 0 : index
    %24 = vector.load %arg7[%c0_15, %c0_16] : memref<1x128xf32, #tpu.memory_space<vmem>>, vector<1x128xf32>
    tpu.vector_store %arg7[%c0_15, %c0_16], %23 {strides = array<i32>} : memref<1x128xf32, #tpu.memory_space<vmem>>, vector<1x128xf32>,
    return
  }
  func.func @transform_0(%arg0: i32) -> (i32, i32) {
    %c0_i32 = arith.constant 0 : i32
    %c0_i32_0 = arith.constant 0 : i32
    return %c0_i32, %arg0 : i32, i32
  }
  func.func @transform_1(%arg0: i32) -> (i32, i32) {
    %c0_i32 = arith.constant 0 : i32
    %c0_i32_0 = arith.constant 0 : i32
    %c0_i32_1 = arith.constant 0 : i32
    return %c0_i32, %c0_i32_0 : i32, i32
  }
  func.func @transform_2(%arg0: i32) -> (i32, i32) {
    %c0_i32 = arith.constant 0 : i32
    %c0_i32_0 = arith.constant 0 : i32
    %c0_i32_1 = arith.constant 0 : i32
    return %c0_i32, %c0_i32_0 : i32, i32
  }
  func.func @transform_3(%arg0: i32) -> (i32, i32) {
    %c0_i32 = arith.constant 0 : i32
    %c0_i32_0 = arith.constant 0 : i32
    %c0_i32_1 = arith.constant 0 : i32
    return %c0_i32, %c0_i32_0 : i32, i32
  }
  func.func @transform_4(%arg0: i32) -> (i32, i32) {
    %c0_i32 = arith.constant 0 : i32
    %c0_i32_0 = arith.constant 0 : i32
    %c0_i32_1 = arith.constant 0 : i32
    return %c0_i32, %c0_i32_0 : i32, i32
  }
  func.func @transform_5(%arg0: i32) -> (i32, i32) {
    %c0_i32 = arith.constant 0 : i32
    %c0_i32_0 = arith.constant 0 : i32
    %c0_i32_1 = arith.constant 0 : i32
    return %c0_i32, %c0_i32_0 : i32, i32
  }
  func.func @transform_6(%arg0: i32) -> (i32, i32) {
    %c0_i32 = arith.constant 0 : i32
    %c0_i32_0 = arith.constant 0 : i32
    return %c0_i32, %arg0 : i32, i32
  }
}

</mosaic_0001>

<bundles_post_ra>
// kernel: tpu_custom_call.1
= control target key start
LH: loop header
LB: loop body
LE: loop exit
PB: predicated region body
PF: predicated region fallthrough
CT: control target
= control target key end

     0   :  { %s481_s0 = inlined_call_operand.vmem [shape: f32[32,128], index: 0, kind: input, shape index: {}]   ;;  %s482_s1 = inlined_call_operand.hbm [shape: f32[16,32], index: 1, kind: input, shape index: {}]   ;;  %s483_s2 = inlined_call_operand.vmem [shape: f32[16,1], index: 2, kind: input, shape index: {}]   ;;  %s484_s3 = inlined_call_operand.vmem [shape: f32[16,1], index: 3, kind: input, shape index: {}]   ;;  %s485_s4 = inlined_call_operand.vmem [shape: f32[1,16], index: 4, kind: input, shape index: {}]   ;;  %s486_s5 = inlined_call_operand.<no memory space> [shape: f32[1,1], index: 5, kind: input, shape index: {}]   ;;  %s487_s6 = inlined_call_operand.hbm [shape: f32[1,128], index: 6, kind: output, shape index: {}]  }
   0x1   :  { %v11_v0 = vstv %s486_s5 }
   0x2   :  { %12 = vst [vmem:[#allocation2] sm:$0x1] %v11_v0 }
   0x3   :  { %13 = vsyncpa [#allocation4], 0 }
   0x4   :  { %14 = vsyncpa [#allocation5], 0  ;;  %s382_s23 = smov [#allocation3]   ;;  %s334_s27 = scalar_lea.hbm %s482_s1, 256 }
   0x5   :  { %s22_s24 = sshll.u32 %s382_s23, 4  ;;  %p335_p0 = scmp.ne.s32.totalorder %s482_s1, %s334_s27  ;;  %s23_s24 = int_to_ptr.vmem [resolvable:$true] %s22_s24 }
   0x6   :  { %p338_p1 = scmp.lt.u32.totalorder %s334_s27, %s482_s1 }
   0x8   :  { %p340_p2 = pnand %p338_p1, %p335_p0 }
   0xa   :  { %343 = shalt.err (!%p340_p2)
}
   0xb   :  { %s344_s5 = scalar_lea.vmem %s23_s24, 256  ;;  %p349_p4 = scmp.lt.s32.totalorder %s23_s24, %s23_s24 }
   0xc   :  { %p345_p3 = scmp.ne.s32.totalorder %s23_s24, %s344_s5  ;;  %p350_p5 = scmp.lt.s32.totalorder %s344_s5, %s344_s5 }
   0xe   :  { %p351_p6 = por %p350_p5, %p349_p4 }
  0x10   :  { %p352_p7 = pnand %p351_p6, %p345_p3 }
  0x12   :  { %355 = shalt.err (!%p352_p7)
}
  0x13   :  { %s383_s8 = smov 128   ;;  %s384_s9 = smov 8  }
  0x14   :  { %28 = dma.hbm_to_vmem [thread:$0]  %s482_s1, 256, %s23_s24, [#allocation4], %s383_s8, %s383_s8, %s384_s9  }
  0x15   :  { %378 = dma.done.wait [#allocation4], 256  }
  0x16   :  { %379 = vsyncadd [#allocation4], 4294967040  ;;  %v385_v1 = vmov 0   ;;  %vm65_vm0 = vcmask 261120   ;;  %v40_v2 = vld [vmem:[%s481_s0] sm:$0xff]  ;;  %v41_v3 = vld [vmem:[%s481_s0 + $0x8] sm:$0xff]  ;;  %v185_v51 = vlaneseq }
  0x17   :  { %328 = vset.pattern.permute.xlu0 %v385_v1  ;;  %329 = vset.pattern.permute.xlu1 %v385_v1  ;;  %v42_v4 = vld [vmem:[%s481_s0 + $0x10] sm:$0xff]  ;;  %v52_v5 = vmul.f32 %v40_v2, %v40_v2  ;;  %v53_v6 = vmul.f32 %v41_v3, %v41_v3  ;;  %v309_v7 = vpack.c.bf16 %v41_v3, %v40_v2  ;;  %v43_v8 = vld [vmem:[%s481_s0 + $0x18] sm:$0xff]  ;;  %v44_v10 = vld [vmem:[#allocation3] sm:$0xff]  ;;  %v386_v22 = vmov 0.0|0.0   ;;  %s389_s26 = smov [#allocation6]  }
  0x18   :  { %v54_v9 = vmul.f32 %v42_v4, %v42_v4  ;;  %v313_v11 = vpack.c.bf16 %v43_v8, %v42_v4  ;;  %299 = vmatprep.mubr.msk.f32.mxu0 %vm65_vm0, %v44_v10  ;;  %v46_v12 = vld [vmem:[%s483_s2] sm:$0xff]  ;;  %v55_v15 = vmul.f32 %v43_v8, %v43_v8  ;;  %v47_v16 = vld [vmem:[%s483_s2 + $0x8] sm:$0xff]  ;;  %317 = vmatprep.subr.bf16.mxu1 %v386_v22  ;;  %vm387_vm1 = vmmov 0   ;;  %s270_s27 = sshll.u32 %s389_s26, 4  ;;  %s271_s27 = int_to_ptr.vmem [resolvable:$true] %s270_s27 }
  0x19   :  { %v48_v13 = vld [vmem:[%s484_s3] sm:$0xff]  ;;  %v56_v14 = vadd.f32 %v53_v6, %v52_v5  ;;  %310 = vmatprep.subr.bf16.mxu0 %v309_v7  ;;  %152 = vperm.xlu0 %328, %v46_v12   ;;  %v49_v18 = vld [vmem:[%s484_s3 + $0x8] sm:$0xff]  ;;  %v388_v23 = vmov 0.0   ;;  %vm189_vm2 = vcmask 130048   ;;  %v186_v52 = vshrl.u32 %v185_v51, 7  ;;  %s356_s28 = scalar_lea.vmem %s271_s27, 16  ;;  %p361_p9 = scmp.lt.s32.totalorder %s271_s27, %s271_s27 }
  0x1a   :  { %312 = vmatpush3.bf16.msra.mxu0 %v309_v7  ;;  %164 = vperm.xlu1 %329, %v48_v13   ;;  %v45_v20 = vld [vmem:[#allocation3 + $0x8] sm:$0xff]  ;;  %v51_v21 = vld [vmem:[#allocation2] sm:$0x1]  ;;  %p357_p8 = scmp.ne.s32.totalorder %s271_s27, %s356_s28  ;;  %s360_s29 = scalar_lea.vmem %s271_s27, 32 }
  0x1b   :  { %v57_v17 = vadd.f32 %v56_v14, %v54_v9  ;;  %314 = vmatprep.subr.bf16.mxu0 %v313_v11  ;;  %306 = vmatprep.mubr.msk.f32.mxu1 %vm387_vm1, %v388_v23  ;;  %v50_v50 = vld [vmem:[%s485_s4] sm:$0x1]  ;;  %v187_v53 = vsub.s32 0, %v186_v52  ;;  %p362_p10 = scmp.lt.s32.totalorder %s360_s29, %s356_s28 }
  0x1d   :  { %v58_v19 = vadd.f32 %v57_v17, %v55_v15  ;;  %157 = vperm.xlu0 %328, %v47_v16   ;;  %p363_p11 = por %p362_p10, %p361_p9 }
  0x1e   :  { %316 = vmatpush3.bf16.msra.mxu0 %v313_v11  ;;  %169 = vperm.xlu1 %329, %v49_v18  }
  0x1f   :  { %v59_v24 = vrot.slane %v58_v19, 4  ;;  %p364_p12 = pnand %p363_p11, %p357_p8 }
  0x21   :  { %300 = vmatmul.mubr.msk.f32.vlgmr.msra.gmra.mrb[0].mxu0 %vm65_vm0, %v45_v20  ;;  %182 = vperm.xlu0 %328, %v51_v21   ;;  %v60_v25 = vadd.f32 %v59_v24, %v58_v19 }
  0x23   :  { %v61_v26 = vrot.slane %v60_v25, 2 }
  0x25   :  { %v62_v27 = vadd.f32 %v61_v26, %v60_v25 }
  0x27   :  { %v63_v28 = vrot.slane %v62_v27, 1 }
  0x29   :  { %v64_v29 = vadd.f32 %v63_v28, %v62_v27 }
  0x2b   :  { %v147_v31 = vmul.f32 0.5, %v64_v29 }
  0x98   :  { %v153_v30 = vpop.permute.xlu0 %152 }
  0x99   :  { %v165_v32 = vpop.permute.xlu1 %164 }
  0x9c   :  { %v158_v36 = vpop.permute.xlu0 %157 }
  0x9d   :  { %v170_v39 = vpop.permute.xlu1 %169 }
  0xa0   :  { %v183_v54 = vpop.permute.xlu0 %182 }
  0xa1   :  { %v188_v55 = vrot.slane %v183_v54, %v187_v53 }
  0xf4   :  { %v301_v33 = vpop.f32.mrb[0].mxu0 }
  0xf5   :  { %v149_v34 = vsub.f32 %v301_v33, %v147_v31  ;;  %v138_v35 = vpop.f32.mrb[1].mxu0 }
  0xf6   :  { %v148_v37 = vsub.f32 %v138_v35, %v147_v31 }
  0xf7   :  { %v161_v38 = vadd.f32 %v158_v36, %v149_v34 }
  0xf8   :  { %v160_v40 = vadd.f32 %v153_v30, %v148_v37 }
  0xf9   :  { %v173_v41 = vmul.f32 %v170_v39, %v161_v38 }
  0xfa   :  { %v172_v42 = vmul.f32 %v165_v32, %v160_v40 }
  0xfb   :  { %v175_v43 = vmin.f32 %v173_v41, 0.0 }
  0xfc   :  { %v174_v44 = vmin.f32 %v172_v42, 0.0 }
  0xfd   :  { %v178_v45 = vmul.f32 1.442695, %v175_v43 }
  0xfe   :  { %v176_v46 = vmul.f32 1.442695, %v174_v44 }
  0xff   :  { %330 = vpow2.f32 %v178_v45 }
 0x100   :  { %332 = vpow2.f32 %v176_v46 }
 0x109   :  { %v331_v47 = vpop.eup %330 }
 0x10a   :  { %v333_v48 = vpop.eup %332 }
 0x10b   :  { %v318_v49 = vpack.c.bf16 %v331_v47, %v333_v48 }
 0x10d   :  { %319 = vmatpush3.bf16.msra.mxu1 %v318_v49 }
 0x110   :  { %307 = vmatmul.mubr.msk.f32.vlgmr.msra.gmra.mrb[0].mxu1 %vm189_vm2, %v50_v50 }
 0x1e3   :  { %v259_v56 = vpop.f32.mrb[0].mxu1 }
 0x1e4   :  { %v260_v57 = vadd.f32 %v259_v56, %v188_v55  ;;  %v308_v58 = vpop.f32.mrb[1].mxu1 }
 0x1e6   :  { %263 = vst [vmem:[#allocation6] sm:$0x1] %v260_v57 }
 0x1e7   :  { %367 = shalt.err (!%p364_p12)
}
 0x1e8   :  { %s368_s7 = scalar_lea.hbm %s487_s6, 16 }
 0x1e9   :  { %p369_p13 = scmp.ne.s32.totalorder %s487_s6, %s368_s7  ;;  %p372_p0 = scmp.lt.u32.totalorder %s368_s7, %s487_s6 }
 0x1eb   :  { %p374_p1 = pnand %p372_p0, %p369_p13 }
 0x1ed   :  { %377 = shalt.err (!%p374_p1)
}
 0x1ee   :  { %273 = dma.vmem_to_hbm [thread:$0]  %s271_s27, 16, %s487_s6, [#allocation5]  }
 0x1ef   :  { %380 = dma.done.wait [#allocation5], 16  }
 0x1f0   :  { %381 = vsyncadd [#allocation5], 4294967280 }
 0x1f1   :  { %277 = vsyncpa [#allocation4], 1 }
 0x1f2   :  { %278 = vsyncpa [#allocation5], 1 }

</bundles_post_ra>
